<compile_context>
chip_gen: v5e
topology: v5e:2x2
jax: 0.10.0
libtpu: 0.0.40
codegen_flags: <defaults>
</compile_context>

<pallas_src>
import functools

import jax
import jax.numpy as jnp
from jax.experimental import pallas as pl
from jax.experimental.pallas import tpu as pltpu

IN_FEATURES = 784
OUT_FEATURES = 10
DEFAULT_TILE_ROWS = 2048       # ~20 MiB working set; safe on v5e/v6e/v7x
DEFAULT_VMEM_LIMIT = 40 << 20  # raised scoped VMEM; < 64 MiB v7x physical


def _round_up(x, m):
    return ((x + m - 1) // m) * m


def _svm_linear_kernel(x_ref, w_ref, b_ref, o_ref, *, mxu_bf16):
    # Hot path: one MXU matmul per row tile + bias add, all in VMEM.
    x = x_ref[...]
    w = w_ref[...]
    if mxu_bf16:
        # Cast MXU operands in-kernel only (no extra HBM pass); f32 accumulate.
        x = x.astype(jnp.bfloat16)
        w = w.astype(jnp.bfloat16)
    acc = jnp.dot(x, w, preferred_element_type=jnp.float32)
    o_ref[...] = (acc + b_ref[...]).astype(o_ref.dtype)


def svm_forward(x, weight, bias, *, tile_rows=DEFAULT_TILE_ROWS,
                mxu_bf16=True, vmem_limit_bytes=DEFAULT_VMEM_LIMIT):
    """Forward of SVM: x.view(-1, 784) @ weight.T + bias.

    x:      any shape with total elements divisible by 784.
    weight: (10, 784) float32 (PyTorch nn.Linear layout).
    bias:   (10,) float32.
    mxu_bf16: cast MXU operands to bf16 inside the kernel (f32 accumulation).
              Set False for exact fp32 nn.Linear numerics.
    """
    assert x.size % IN_FEATURES == 0, "x element count must be divisible by 784"
    x2 = x.reshape(-1, IN_FEATURES)
    n = x2.shape[0]
    out_dtype = x2.dtype

    # Pre-transposed weight stays VMEM-resident; cast is tiny (784x10).
    w_t = weight.T
    if mxu_bf16:
        w_t = w_t.astype(jnp.bfloat16)
    b2 = bias.reshape(1, OUT_FEATURES).astype(jnp.float32)

    # Row tile: multiple of 8 sublanes (BlockSpec (8,128) rule), capped by n.
    # Pallas masks the partial last block when tile does not divide n.
    tile = max(8, min(_round_up(tile_rows, 8), _round_up(n, 8)))
    grid = (pl.cdiv(n, tile),)

    x_item = jnp.dtype(x2.dtype).itemsize
    cost = pl.CostEstimate(
        flops=2 * n * IN_FEATURES * OUT_FEATURES,
        transcendentals=0,
        bytes_accessed=(n * IN_FEATURES * x_item
                        + IN_FEATURES * OUT_FEATURES * jnp.dtype(w_t.dtype).itemsize
                        + OUT_FEATURES * 4
                        + n * OUT_FEATURES * jnp.dtype(out_dtype).itemsize),
    )

    kernel = functools.partial(_svm_linear_kernel, mxu_bf16=mxu_bf16)

    return pl.pallas_call(
        kernel,
        out_shape=jax.ShapeDtypeStruct((n, OUT_FEATURES), out_dtype),
        grid_spec=pltpu.PrefetchScalarGridSpec(
            num_scalar_prefetch=0,
            grid=grid,
            in_specs=[
                # x: tiled along rows -> double-buffered HBM->VMEM DMAs.
                pl.BlockSpec((tile, IN_FEATURES), lambda i: (i, 0)),
                # weight / bias: constant block index -> stay VMEM-resident.
                pl.BlockSpec((IN_FEATURES, OUT_FEATURES), lambda i: (0, 0)),
                pl.BlockSpec((1, OUT_FEATURES), lambda i: (0, 0)),
            ],
            # Un-padded output: 10-lane block equals the full array dim.
            out_specs=pl.BlockSpec((tile, OUT_FEATURES), lambda i: (i, 0)),
        ),
        compiler_params=pltpu.CompilerParams(
            # Independent row tiles -> shardable across v7x's 2 TensorCores.
            dimension_semantics=("parallel",),
            vmem_limit_bytes=vmem_limit_bytes,
        ),
        cost_estimate=cost,
    )(x2, w_t, b2)


def init_params(key):
    # Deterministic init mimicking nn.Linear default: U(-1/sqrt(fan_in), ...)
    k_w, k_b = jax.random.split(key)
    bound = 1.0 / float(IN_FEATURES ** 0.5)
    weight = jax.random.uniform(
        k_w, (OUT_FEATURES, IN_FEATURES), jnp.float32, -bound, bound)
    bias = jax.random.uniform(
        k_b, (OUT_FEATURES,), jnp.float32, -bound, bound)
    return weight, bias


if __name__ == "__main__":
    key = jax.random.PRNGKey(0)
    k_x, k_p = jax.random.split(key)

    batch = 64  # matches the PyTorch script's batch_size
    x = jax.random.normal(k_x, (batch, 1, 28, 28), jnp.float32)  # NCHW MNIST-like
    weight, bias = init_params(k_p)
    x2 = x.reshape(-1, IN_FEATURES)

    # Default fast path: bf16 MXU operands, f32 accumulation.
    out = jax.block_until_ready(svm_forward(x, weight, bias))
    ref_bf16 = (jnp.dot(x2.astype(jnp.bfloat16), weight.T.astype(jnp.bfloat16),
                        preferred_element_type=jnp.float32) + bias)
    assert out.shape == (batch, OUT_FEATURES)
    assert jnp.allclose(out, ref_bf16, atol=1e-3, rtol=1e-3)

    # Exact fp32 path (preserves nn.Linear fp32 numerics).
    out_f32 = jax.block_until_ready(svm_forward(x, weight, bias, mxu_bf16=False))
    ref_f32 = jnp.dot(x2, weight.T, precision=jax.lax.Precision.HIGHEST) + bias
    assert jnp.allclose(out_f32, ref_f32, atol=1e-4, rtol=1e-4)

    # Multi-step grid with a non-tile-multiple row count (masked last block).
    k_x2, _ = jax.random.split(k_x)
    x_big = jax.random.normal(k_x2, (200, IN_FEATURES), jnp.float32)
    out_big = jax.block_until_ready(svm_forward(x_big, weight, bias, tile_rows=64))
    ref_big = (jnp.dot(x_big.astype(jnp.bfloat16), weight.T.astype(jnp.bfloat16),
                       preferred_element_type=jnp.float32) + bias)
    assert out_big.shape == (200, OUT_FEATURES)
    assert jnp.allclose(out_big, ref_big, atol=1e-3, rtol=1e-3)

    print("KERNEL_OK")
</pallas_src>

<mosaic_0001>
module attributes {stable_mosaic.version = 11 : i64} {
  func.func @_svm_linear_kernel(%arg0: i32, %arg1: memref<64x784xf32, #tpu.memory_space<vmem>>, %arg2: memref<784x10xbf16, #tpu.memory_space<vmem>>, %arg3: memref<1x10xf32, #tpu.memory_space<vmem>>, %arg4: memref<64x10xf32, #tpu.memory_space<vmem>>) attributes {dimension_semantics = [#tpu.dimension_semantics<parallel>], iteration_bounds = array<i64: 1>, scalar_prefetch = 0 : i64, scratch_operands = 0 : i64, tpu.core_type = #tpu.core_type<tc>, window_params = [{transform_indices = @transform_0, window_bounds = array<i64: 64, 784>}, {pipeline_mode = #tpu.pipeline_mode<synchronous>, transform_indices = @transform_1, window_bounds = array<i64: 784, 10>}, {pipeline_mode = #tpu.pipeline_mode<synchronous>, transform_indices = @transform_2, window_bounds = array<i64: 1, 10>}, {transform_indices = @transform_3, window_bounds = array<i64: 64, 10>}]} {
    %c0 = arith.constant 0 : index
    %c0_0 = arith.constant 0 : index
    %0 = vector.load %arg1[%c0, %c0_0] : memref<64x784xf32, #tpu.memory_space<vmem>>, vector<64x784xf32>
    %c0_1 = arith.constant 0 : index
    %c0_2 = arith.constant 0 : index
    %1 = vector.load %arg2[%c0_1, %c0_2] : memref<784x10xbf16, #tpu.memory_space<vmem>>, vector<784x10xbf16>
    %2 = arith.truncf %0 : vector<64x784xf32> to vector<64x784xbf16>
    %cst = arith.constant dense<0.000000e+00> : vector<64x10xf32>
    %3 = tpu.matmul %2, %1, %cst {dimension_numbers = #tpu.dot_dimension_numbers<[1], [0], [0], [1], [0, 0, 1, 1], [], []>} : vector<64x784xbf16>, vector<784x10xbf16>, vector<64x10xf32> -> vector<64x10xf32>
    %c0_3 = arith.constant 0 : index
    %c0_4 = arith.constant 0 : index
    %4 = vector.load %arg3[%c0_3, %c0_4] : memref<1x10xf32, #tpu.memory_space<vmem>>, vector<1x10xf32>
    %5 = vector.broadcast %4 : vector<1x10xf32> to vector<64x10xf32>
    %6 = arith.addf %3, %5 : vector<64x10xf32>
    %c0_5 = arith.constant 0 : index
    %c0_6 = arith.constant 0 : index
    %7 = vector.load %arg4[%c0_5, %c0_6] : memref<64x10xf32, #tpu.memory_space<vmem>>, vector<64x10xf32>
    tpu.vector_store %arg4[%c0_5, %c0_6], %6 {strides = array<i32>} : memref<64x10xf32, #tpu.memory_space<vmem>>, vector<64x10xf32>,
    return
  }
  func.func @transform_0(%arg0: i32) -> (i32, i32) {
    %c0_i32 = arith.constant 0 : i32
    %c0_i32_0 = arith.constant 0 : i32
    return %arg0, %c0_i32 : i32, i32
  }
  func.func @transform_1(%arg0: i32) -> (i32, i32) {
    %c0_i32 = arith.constant 0 : i32
    %c0_i32_0 = arith.constant 0 : i32
    %c0_i32_1 = arith.constant 0 : i32
    return %c0_i32, %c0_i32_0 : i32, i32
  }
  func.func @transform_2(%arg0: i32) -> (i32, i32) {
    %c0_i32 = arith.constant 0 : i32
    %c0_i32_0 = arith.constant 0 : i32
    %c0_i32_1 = arith.constant 0 : i32
    return %c0_i32, %c0_i32_0 : i32, i32
  }
  func.func @transform_3(%arg0: i32) -> (i32, i32) {
    %c0_i32 = arith.constant 0 : i32
    %c0_i32_0 = arith.constant 0 : i32
    return %arg0, %c0_i32 : i32, i32
  }
}

</mosaic_0001>

<bundles_post_ra>
// kernel: tpu_custom_call.1
= control target key start
LH: loop header
LB: loop body
LE: loop exit
PB: predicated region body
PF: predicated region fallthrough
CT: control target
= control target key end

     0   :  { %8 = vsyncpa [#allocation3], 0  ;;  %s1033_s15 = smov [#allocation2]   ;;  %s1459_s0 = inlined_call_operand.vmem [shape: f32[64,784], index: 0, kind: input, shape index: {}]   ;;  %s1460_s1 = inlined_call_operand.vmem [shape: bf16[784,10], index: 1, kind: input, shape index: {}]   ;;  %s1461_s2 = inlined_call_operand.hbm [shape: f32[1,10], index: 2, kind: input, shape index: {}]   ;;  %s1462_s3 = inlined_call_operand.vmem [shape: f32[64,10], index: 3, kind: output, shape index: {}]  }
   0x1   :  { %s18_s14 = sshll.u32 %s1461_s2, 4  ;;  %s20_s16 = sshll.u32 %s1033_s15, 4  ;;  %s19_s14 = int_to_ptr.hbm [resolvable:$true] %s18_s14  ;;  %s21_s16 = int_to_ptr.vmem [resolvable:$true] %s20_s16 }
   0x2   :  { %23 = dma.hbm_to_vmem [thread:$0]  %s19_s14, 16, %s21_s16, [#allocation3]  }
   0x3   :  { %1031 = dma.done.wait [#allocation3], 16  }
   0x4   :  { %1032 = vsyncadd [#allocation3], 4294967280  ;;  %v946_v0 = vld [vmem:[%s1460_s1 + $0x38] sm:$0xff]  ;;  %v945_v3 = vld [vmem:[%s1460_s1 + $0x30] sm:$0xff]  ;;  %vm509_vm0 = vcmask 130048   ;;  %vm725_vm1 = vcmask 80896  }
   0x5   :  { %v954_v1 = vld [vmem:[%s1460_s1 + $0x78] sm:$0xff]  ;;  %522 = vmatpush.bf16.msra.mxu0 %v946_v0  ;;  %988 = vmatpush.bf16.msra.mxu3 %v946_v0  ;;  %v953_v4 = vld [vmem:[%s1460_s1 + $0x70] sm:$0xff]  ;;  %v944_v6 = vld [vmem:[%s1460_s1 + $0x28] sm:$0xff] }
   0x6   :  { %v962_v2 = vld [vmem:[%s1460_s1 + $0xb8] sm:$0xff]  ;;  %551 = vmatpush.bf16.msra.mxu1 %v954_v1  ;;  %v961_v5 = vld [vmem:[%s1460_s1 + $0xb0] sm:$0xff]  ;;  %v952_v7 = vld [vmem:[%s1460_s1 + $0x68] sm:$0xff] }
   0x7   :  { %580 = vmatpush.bf16.msra.mxu2 %v962_v2  ;;  %v960_v8 = vld [vmem:[%s1460_s1 + $0xa8] sm:$0xff]  ;;  %v943_v9 = vld [vmem:[%s1460_s1 + $0x20] sm:$0xff]  ;;  %v942_v12 = vld [vmem:[%s1460_s1 + $0x18] sm:$0xff] }
   0x8   :  { %v951_v10 = vld [vmem:[%s1460_s1 + $0x60] sm:$0xff]  ;;  %v950_v13 = vld [vmem:[%s1460_s1 + $0x58] sm:$0xff]  ;;  %v941_v15 = vld [vmem:[%s1460_s1 + $0x10] sm:$0xff] }
   0x9   :  { %523 = vmatpush.bf16.msra.mxu0 %v945_v3  ;;  %989 = vmatpush.bf16.msra.mxu3 %v945_v3  ;;  %v959_v11 = vld [vmem:[%s1460_s1 + $0xa0] sm:$0xff]  ;;  %v958_v14 = vld [vmem:[%s1460_s1 + $0x98] sm:$0xff]  ;;  %v949_v16 = vld [vmem:[%s1460_s1 + $0x50] sm:$0xff] }
   0xa   :  { %552 = vmatpush.bf16.msra.mxu1 %v953_v4  ;;  %v957_v17 = vld [vmem:[%s1460_s1 + $0x90] sm:$0xff]  ;;  %v940_v18 = vld [vmem:[%s1460_s1 + $0x8] sm:$0xff]  ;;  %v939_v21 = vld [vmem:[%s1460_s1] sm:$0xff] }
   0xb   :  { %581 = vmatpush.bf16.msra.mxu2 %v961_v5  ;;  %v948_v19 = vld [vmem:[%s1460_s1 + $0x48] sm:$0xff]  ;;  %v947_v22 = vld [vmem:[%s1460_s1 + $0x40] sm:$0xff]  ;;  %v36_v25 = vld [vmem:[%s1459_s0 + $0x38] sm:$0xff] }
   0xc   :  { %v956_v20 = vld [vmem:[%s1460_s1 + $0x88] sm:$0xff]  ;;  %v955_v23 = vld [vmem:[%s1460_s1 + $0x80] sm:$0xff]  ;;  %v64_v27 = vld [vmem:[%s1459_s0 + $0x118] sm:$0xff] }
   0xd   :  { %524 = vmatpush.bf16.msra.mxu0 %v944_v6  ;;  %990 = vmatpush.bf16.msra.mxu3 %v944_v6  ;;  %v29_v24 = vld [vmem:[%s1459_s0] sm:$0xff]  ;;  %v30_v28 = vld [vmem:[%s1459_s0 + $0x8] sm:$0xff]  ;;  %v31_v30 = vld [vmem:[%s1459_s0 + $0x10] sm:$0xff] }
   0xe   :  { %553 = vmatpush.bf16.msra.mxu1 %v952_v7  ;;  %v57_v26 = vld [vmem:[%s1459_s0 + $0xe0] sm:$0xff]  ;;  %v38_v31 = vld [vmem:[%s1459_s0 + $0x48] sm:$0xff]  ;;  %v970_v32 = vld [vmem:[%s1460_s1 + $0xf8] sm:$0xff]  ;;  %v183_v34 = vpack.c.bf16 %v36_v25, %v29_v24 }
   0xf   :  { %582 = vmatpush.bf16.msra.mxu2 %v960_v8  ;;  %v37_v29 = vld [vmem:[%s1459_s0 + $0x40] sm:$0xff]  ;;  %v197_v35 = vpack.c.bf16 %v64_v27, %v57_v26  ;;  %v185_v37 = vpack.c.bf16 %v38_v31, %v31_v30  ;;  %v978_v38 = vld [vmem:[%s1460_s1 + $0x138] sm:$0xff]  ;;  %v969_v40 = vld [vmem:[%s1460_s1 + $0xf0] sm:$0xff] }
  0x10   :  { %v1159_v33 = vld [vmem:[%s1460_s1 + $0x180] sm:$0xff]  ;;  %v184_v36 = vpack.c.bf16 %v37_v29, %v30_v28  ;;  %v1167_v39 = vld [vmem:[%s1460_s1 + $0x178] sm:$0xff]  ;;  %v977_v41 = vld [vmem:[%s1460_s1 + $0x130] sm:$0xff] }
  0x11   :  { %525 = vmatpush.bf16.msra.mxu0 %v943_v9  ;;  %991 = vmatpush.bf16.msra.mxu3 %v943_v9  ;;  %v1180_v42 = vld [vmem:[%s1460_s1 + $0x170] sm:$0xff]  ;;  %v968_v43 = vld [vmem:[%s1460_s1 + $0xe8] sm:$0xff]  ;;  %v967_v46 = vld [vmem:[%s1460_s1 + $0xe0] sm:$0xff] }
  0x12   :  { %554 = vmatpush.bf16.msra.mxu1 %v951_v10  ;;  %v976_v44 = vld [vmem:[%s1460_s1 + $0x128] sm:$0xff]  ;;  %v975_v47 = vld [vmem:[%s1460_s1 + $0x120] sm:$0xff]  ;;  %v43_v48 = vld [vmem:[%s1459_s0 + $0x70] sm:$0xff] }
  0x13   :  { %583 = vmatpush.bf16.msra.mxu2 %v959_v11  ;;  %v1192_v45 = vld [vmem:[%s1460_s1 + $0x168] sm:$0xff]  ;;  %v71_v50 = vld [vmem:[%s1459_s0 + $0x150] sm:$0xff]  ;;  %v44_v52 = vld [vmem:[%s1459_s0 + $0x78] sm:$0xff] }
  0x14   :  { %v50_v49 = vld [vmem:[%s1459_s0 + $0xa8] sm:$0xff]  ;;  %v51_v53 = vld [vmem:[%s1459_s0 + $0xb0] sm:$0xff]  ;;  %v45_v54 = vld [vmem:[%s1459_s0 + $0x80] sm:$0xff] }
  0x15   :  { %526 = vmatpush.bf16.msra.mxu0 %v942_v12  ;;  %992 = vmatpush.bf16.msra.mxu3 %v942_v12  ;;  %v78_v51 = vld [vmem:[%s1459_s0 + $0x188] sm:$0xff]  ;;  %v52_v55 = vld [vmem:[%s1459_s0 + $0xb8] sm:$0xff]  ;;  %v1228_v56 = vld [vmem:[%s1460_s1 + $0x160] sm:$0xff]  ;;  %v190_v58 = vpack.c.bf16 %v50_v49, %v43_v48  ;;  %v191_v60 = vpack.c.bf16 %v51_v53, %v44_v52 }
  0x16   :  { %555 = vmatpush.bf16.msra.mxu1 %v950_v13  ;;  %v966_v57 = vld [vmem:[%s1460_s1 + $0xd8] sm:$0xff]  ;;  %v204_v59 = vpack.c.bf16 %v78_v51, %v71_v50  ;;  %v192_v61 = vpack.c.bf16 %v52_v55, %v45_v54  ;;  %v965_v0 = vld [vmem:[%s1460_s1 + $0xd0] sm:$0xff]  ;;  %v964_v3 = vld [vmem:[%s1460_s1 + $0xc8] sm:$0xff] }
  0x17   :  { %584 = vmatpush.bf16.msra.mxu2 %v958_v14  ;;  %v974_v62 = vld [vmem:[%s1460_s1 + $0x118] sm:$0xff]  ;;  %v973_v1 = vld [vmem:[%s1460_s1 + $0x110] sm:$0xff]  ;;  %v972_v4 = vld [vmem:[%s1460_s1 + $0x108] sm:$0xff] }
  0x18   :  { %v982_v63 = vld [vmem:[%s1460_s1 + $0x158] sm:$0xff]  ;;  %v981_v2 = vld [vmem:[%s1460_s1 + $0x150] sm:$0xff]  ;;  %v980_v5 = vld [vmem:[%s1460_s1 + $0x148] sm:$0xff] }
  0x19   :  { %527 = vmatpush.bf16.msra.mxu0 %v941_v15  ;;  %993 = vmatpush.bf16.msra.mxu3 %v941_v15  ;;  %v963_v6 = vld [vmem:[%s1460_s1 + $0xc0] sm:$0xff]  ;;  %v58_v8 = vld [vmem:[%s1459_s0 + $0xe8] sm:$0xff]  ;;  %v32_v10 = vld [vmem:[%s1459_s0 + $0x18] sm:$0xff] }
  0x1a   :  { %556 = vmatpush.bf16.msra.mxu1 %v949_v16  ;;  %v971_v7 = vld [vmem:[%s1460_s1 + $0x100] sm:$0xff]  ;;  %v39_v11 = vld [vmem:[%s1459_s0 + $0x50] sm:$0xff]  ;;  %v66_v13 = vld [vmem:[%s1459_s0 + $0x128] sm:$0xff] }
  0x1b   :  { %585 = vmatpush.bf16.msra.mxu2 %v957_v17  ;;  %v65_v9 = vld [vmem:[%s1459_s0 + $0x120] sm:$0xff]  ;;  %v59_v12 = vld [vmem:[%s1459_s0 + $0xf0] sm:$0xff]  ;;  %v40_v16 = vld [vmem:[%s1459_s0 + $0x58] sm:$0xff]  ;;  %v186_v17 = vpack.c.bf16 %v39_v11, %v32_v10 }
  0x1c   :  { %v979_v14 = vld [vmem:[%s1460_s1 + $0x140] sm:$0xff]  ;;  %v79_v24 = vld [vmem:[%s1459_s0 + $0x190] sm:$0xff]  ;;  %v80_v26 = vld [vmem:[%s1459_s0 + $0x198] sm:$0xff] }
  0x1d   :  { %528 = vmatpush.bf16.msra.mxu0 %v940_v18  ;;  %994 = vmatpush.bf16.msra.mxu3 %v940_v18  ;;  %v33_v15 = vld [vmem:[%s1459_s0 + $0x20] sm:$0xff]  ;;  %v198_v18 = vpack.c.bf16 %v65_v9, %v58_v8  ;;  %v47_v27 = vld [vmem:[%s1459_s0 + $0x90] sm:$0xff]  ;;  %v54_v28 = vld [vmem:[%s1459_s0 + $0xc8] sm:$0xff] }
  0x1e   :  { %557 = vmatpush.bf16.msra.mxu1 %v948_v19  ;;  %v199_v19 = vpack.c.bf16 %v66_v13, %v59_v12  ;;  %v73_v25 = vld [vmem:[%s1459_s0 + $0x160] sm:$0xff]  ;;  %v56_v50 = vld [vmem:[%s1459_s0 + $0xd8] sm:$0xff]  ;;  %v75_v51 = vld [vmem:[%s1459_s0 + $0x170] sm:$0xff] }
  0x1f   :  { %586 = vmatpush.bf16.msra.mxu2 %v956_v20  ;;  %v187_v20 = vpack.c.bf16 %v40_v16, %v33_v15  ;;  %v206_v31 = vpack.c.bf16 %v80_v26, %v73_v25  ;;  %v69_v48 = vld [vmem:[%s1459_s0 + $0x140] sm:$0xff]  ;;  %v82_v52 = vld [vmem:[%s1459_s0 + $0x1a8] sm:$0xff] }
  0x20   :  { %v49_v49 = vld [vmem:[%s1459_s0 + $0xa0] sm:$0xff] }
  0x21   :  { %529 = vmatpush.bf16.msra.mxu0 %v939_v21  ;;  %995 = vmatpush.bf16.msra.mxu3 %v939_v21  ;;  %v72_v21 = vld [vmem:[%s1459_s0 + $0x158] sm:$0xff]  ;;  %v196_v55 = vpack.c.bf16 %v56_v50, %v49_v49 }
  0x22   :  { %558 = vmatpush.bf16.msra.mxu1 %v947_v22  ;;  %v46_v22 = vld [vmem:[%s1459_s0 + $0x88] sm:$0xff]  ;;  %v205_v30 = vpack.c.bf16 %v79_v24, %v72_v21 }
  0x23   :  { %587 = vmatpush.bf16.msra.mxu2 %v955_v23  ;;  %v53_v23 = vld [vmem:[%s1459_s0 + $0xc0] sm:$0xff] }
  0x24   :  { %530 = vmatmul.bf16.vlgmr.msra.gmra.mxu0 %v183_v34  ;;  %540 = vmatmul.bf16.vlgmr.msra.gmra.mxu3 %v197_v35  ;;  %v193_v29 = vpack.c.bf16 %v53_v23, %v46_v22  ;;  %v67_v34 = vld [vmem:[%s1459_s0 + $0x130] sm:$0xff]  ;;  %v48_v35 = vld [vmem:[%s1459_s0 + $0x98] sm:$0xff] }
  0x25   :  { %609 = vmatpush.bf16.msrb.mxu3 %v970_v32  ;;  %559 = vmatmul.bf16.vlgmr.msra.gmra.mxu1 %v184_v36  ;;  %v194_v32 = vpack.c.bf16 %v54_v28, %v47_v27  ;;  %v55_v36 = vld [vmem:[%s1459_s0 + $0xd0] sm:$0xff] }
  0x26   :  { %588 = vmatmul.bf16.vlgmr.msra.gmra.mxu2 %v185_v37  ;;  %638 = vmatpush.bf16.msrb.mxu0 %v978_v38  ;;  %v35_v37 = vld [vmem:[%s1459_s0 + $0x30] sm:$0xff]  ;;  %v42_v38 = vld [vmem:[%s1459_s0 + $0x68] sm:$0xff] }
  0x27   :  { %703 = vmatpush.bf16.msrb.mxu2 %v1159_v33  ;;  %996 = vmatpush.bf16.msrb.mxu1 %v1167_v39 }
  0x29   :  { %610 = vmatpush.bf16.msrb.mxu3 %v969_v40  ;;  %v68_v40 = vld [vmem:[%s1459_s0 + $0x138] sm:$0xff] }
  0x2a   :  { %639 = vmatpush.bf16.msrb.mxu0 %v977_v41 }
  0x2b   :  { %997 = vmatpush.bf16.msrb.mxu1 %v1180_v42 }
  0x2d   :  { %611 = vmatpush.bf16.msrb.mxu3 %v968_v43  ;;  %v189_v43 = vpack.c.bf16 %v42_v38, %v35_v37 }
  0x2e   :  { %640 = vmatpush.bf16.msrb.mxu0 %v976_v44 }
  0x2f   :  { %998 = vmatpush.bf16.msrb.mxu1 %v1192_v45 }
  0x31   :  { %612 = vmatpush.bf16.msrb.mxu3 %v967_v46  ;;  %v81_v46 = vld [vmem:[%s1459_s0 + $0x1a0] sm:$0xff] }
  0x32   :  { %641 = vmatpush.bf16.msrb.mxu0 %v975_v47  ;;  %v62_v47 = vld [vmem:[%s1459_s0 + $0x108] sm:$0xff] }
  0x33   :  { %999 = vmatpush.bf16.msrb.mxu1 %v1228_v56  ;;  %v202_v54 = vpack.c.bf16 %v69_v48, %v62_v47 }
  0x34   :  { %535 = vmatmul.bf16.gmra.mxu0 %v190_v58  ;;  %545 = vmatmul.bf16.gmra.mxu3 %v204_v59  ;;  %v77_v58 = vld [vmem:[%s1459_s0 + $0x180] sm:$0xff]  ;;  %v84_v59 = vld [vmem:[%s1459_s0 + $0x1b8] sm:$0xff] }
  0x35   :  { %613 = vmatpush.bf16.msrb.mxu3 %v966_v57  ;;  %564 = vmatmul.bf16.gmra.mxu1 %v191_v60  ;;  %v76_v57 = vld [vmem:[%s1459_s0 + $0x178] sm:$0xff]  ;;  %v83_v60 = vld [vmem:[%s1459_s0 + $0x1b0] sm:$0xff] }
  0x36   :  { %593 = vmatmul.bf16.gmra.mxu2 %v192_v61  ;;  %642 = vmatpush.bf16.msrb.mxu0 %v974_v62  ;;  %v63_v61 = vld [vmem:[%s1459_s0 + $0x110] sm:$0xff]  ;;  %v70_v62 = vld [vmem:[%s1459_s0 + $0x148] sm:$0xff] }
  0x37   :  { %1000 = vmatpush.bf16.msrb.mxu1 %v982_v63 }
  0x39   :  { %614 = vmatpush.bf16.msrb.mxu3 %v965_v0  ;;  %v41_v0 = vld [vmem:[%s1459_s0 + $0x60] sm:$0xff] }
  0x3a   :  { %643 = vmatpush.bf16.msrb.mxu0 %v973_v1  ;;  %v210_v1 = vpack.c.bf16 %v84_v59, %v77_v58 }
  0x3b   :  { %1001 = vmatpush.bf16.msrb.mxu1 %v981_v2 }
  0x3d   :  { %615 = vmatpush.bf16.msrb.mxu3 %v964_v3  ;;  %v203_v3 = vpack.c.bf16 %v70_v62, %v63_v61 }
  0x3e   :  { %644 = vmatpush.bf16.msrb.mxu0 %v972_v4 }
  0x3f   :  { %1002 = vmatpush.bf16.msrb.mxu1 %v980_v5 }
  0x41   :  { %616 = vmatpush.bf16.msrb.mxu3 %v963_v6 }
  0x42   :  { %645 = vmatpush.bf16.msrb.mxu0 %v971_v7 }
  0x43   :  { %1003 = vmatpush.bf16.msrb.mxu1 %v979_v14 }
  0x44   :  { %617 = vmatmul.bf16.vlgmr.msrb.gmra.mxu3 %v186_v17 }
  0x45   :  { %1004 = vmatpush.bf16.msra.mxu3 %v1159_v33  ;;  %569 = vmatmul.bf16.gmra.mxu1 %v198_v18  ;;  %v60_v33 = vld [vmem:[%s1459_s0 + $0xf8] sm:$0xff] }
  0x46   :  { %667 = vmatpush.bf16.msra.mxu0 %v1167_v39  ;;  %598 = vmatmul.bf16.gmra.mxu2 %v199_v19  ;;  %v61_v39 = vld [vmem:[%s1459_s0 + $0x100] sm:$0xff]  ;;  %v200_v41 = vpack.c.bf16 %v67_v34, %v60_v33 }
  0x47   :  { %646 = vmatmul.bf16.vlgmr.msrb.gmra.mxu0 %v187_v20  ;;  %v201_v44 = vpack.c.bf16 %v68_v40, %v61_v39 }
  0x4a   :  { %668 = vmatpush.bf16.msra.mxu0 %v1180_v42  ;;  %v195_v42 = vpack.c.bf16 %v55_v36, %v48_v35 }
  0x4e   :  { %669 = vmatpush.bf16.msra.mxu0 %v1192_v45  ;;  %v74_v45 = vld [vmem:[%s1459_s0 + $0x168] sm:$0xff] }
  0x4f   :  { %v207_v53 = vpack.c.bf16 %v81_v46, %v74_v45 }
  0x52   :  { %670 = vmatpush.bf16.msra.mxu0 %v1228_v56  ;;  %v208_v56 = vpack.c.bf16 %v82_v52, %v75_v51 }
  0x54   :  { %622 = vmatmul.bf16.gmra.mxu3 %v193_v29 }
  0x55   :  { %574 = vmatmul.bf16.gmra.mxu1 %v205_v30 }
  0x56   :  { %671 = vmatpush.bf16.msra.mxu0 %v982_v63  ;;  %603 = vmatmul.bf16.gmra.mxu2 %v206_v31  ;;  %v34_v63 = vld [vmem:[%s1459_s0 + $0x28] sm:$0xff] }
  0x57   :  { %651 = vmatmul.bf16.gmra.mxu0 %v194_v32  ;;  %v188_v4 = vpack.c.bf16 %v41_v0, %v34_v63 }
  0x5a   :  { %672 = vmatpush.bf16.msra.mxu0 %v981_v2  ;;  %v209_v2 = vpack.c.bf16 %v83_v60, %v76_v57 }
  0x5e   :  { %673 = vmatpush.bf16.msra.mxu0 %v980_v5  ;;  %v1396_v5 = vld [vmem:[#allocation2] ss:$0 sm:$0xff] }
  0x62   :  { %674 = vmatpush.bf16.msra.mxu0 %v979_v14 }
  0x64   :  { %627 = vmatmul.bf16.gmra.mxu3 %v200_v41 }
  0x65   :  { %680 = vmatmul.bf16.vlgmr.msrb.gmra.mxu1 %v195_v42 }
  0x66   :  { %935 = vmatmul.msk.bf16.vlgmr.msrb.gmra.mxu2 %vm509_vm0, %v189_v43 }
  0x67   :  { %656 = vmatmul.bf16.gmra.mxu0 %v201_v44 }
  0x74   :  { %632 = vmatmul.bf16.gmra.mxu3 %v207_v53 }
  0x75   :  { %685 = vmatmul.bf16.gmra.mxu1 %v202_v54 }
  0x76   :  { %936 = vmatmul.msk.bf16.gmra.mxu2 %vm509_vm0, %v196_v55 }
  0x77   :  { %661 = vmatmul.bf16.gmra.mxu0 %v208_v56 }
  0x84   :  { %938 = vmatmul.msk.bf16.vlgmr.msra.gmra.mxu3 %vm509_vm0, %v210_v1 }
  0x85   :  { %690 = vmatmul.bf16.gmra.mxu1 %v209_v2 }
  0x86   :  { %937 = vmatmul.msk.bf16.gmra.mxu2 %vm509_vm0, %v203_v3 }
  0x87   :  { %675 = vmatmul.bf16.vlgmr.msra.gmra.mxu0 %v188_v4 }
  0xa1   :  { %v531_v6 = vpop.f32.mrf.mxu0 }
  0xa2   :  { %v532_v7 = vadd.f32 %v1396_v5, %v531_v6  ;;  %v560_v8 = vpop.f32.mrf.mxu1 }
  0xa4   :  { %v561_v9 = vadd.f32 %v560_v8, %v532_v7 }
  0xa7   :  { %v541_v10 = vpop.f32.mrf.mxu3 }
  0xa8   :  { %v542_v6 = vadd.f32 %v1396_v5, %v541_v10 }
  0xa9   :  { %v589_v11 = vpop.f32.mrf.mxu2  ;;  %v533_v13 = vpop.f32.mrf.mxu0 }
  0xaa   :  { %v1399_v12 = vadd.f32 %v589_v11, %v561_v9  ;;  %v534_v14 = vadd.f32 %v1396_v5, %v533_v13  ;;  %v562_v15 = vpop.f32.mrf.mxu1 }
  0xac   :  { %v563_v16 = vadd.f32 %v562_v15, %v534_v14 }
  0xaf   :  { %v1402_v17 = vpop.f32.mrf.mxu3 }
  0xb1   :  { %v591_v18 = vpop.f32.mrf.mxu2  ;;  %v536_v20 = vpop.f32.mrf.mxu0 }
  0xb2   :  { %v1404_v19 = vadd.f32 %v591_v18, %v563_v16  ;;  %v565_v21 = vpop.f32.mrf.mxu1  ;;  %v537_v46 = vadd.f32 %v1396_v5, %v536_v20 }
  0xb4   :  { %v566_v50 = vadd.f32 %v565_v21, %v537_v46 }
  0xb7   :  { %v546_v22 = vpop.f32.mrf.mxu3 }
  0xb8   :  { %v547_v3 = vadd.f32 %v1396_v5, %v546_v22 }
  0xb9   :  { %v594_v23 = vpop.f32.mrf.mxu2  ;;  %v538_v24 = vpop.f32.mrf.mxu0 }
  0xba   :  { %v567_v25 = vpop.f32.mrf.mxu1  ;;  %v595_v52 = vadd.f32 %v594_v23, %v566_v50  ;;  %v539_v55 = vadd.f32 %v1396_v5, %v538_v24 }
  0xbc   :  { %v568_v59 = vadd.f32 %v567_v25, %v539_v55 }
  0xbf   :  { %v548_v26 = vpop.f32.mrf.mxu3 }
  0xc0   :  { %v549_v10 = vadd.f32 %v1396_v5, %v548_v26 }
  0xc1   :  { %v596_v27 = vpop.f32.mrf.mxu2 }
  0xc2   :  { %v570_v28 = vpop.f32.mrf.mxu1  ;;  %v597_v61 = vadd.f32 %v596_v27, %v568_v59  ;;  %v544_v27 = vadd.f32 %v1396_v5, %v1402_v17 }
  0xc3   :  { %v571_v9 = vadd.f32 %v570_v28, %v542_v6 }
  0xc4   :  { %v647_v29 = vpop.f32.mrf.mxu0 }
  0xc7   :  { %v618_v30 = vpop.f32.mrf.mxu3 }
  0xc8   :  { %v619_v13 = vadd.f32 %v618_v30, %v1399_v12 }
  0xc9   :  { %v599_v31 = vpop.f32.mrf.mxu2 }
  0xca   :  { %v572_v32 = vpop.f32.mrf.mxu1  ;;  %v600_v15 = vadd.f32 %v599_v31, %v571_v9  ;;  %v648_v24 = vadd.f32 %v647_v29, %v619_v13 }
  0xcc   :  { %v1406_v33 = vpop.f32.mrf.mxu0 }
  0xcf   :  { %v620_v34 = vpop.f32.mrf.mxu3 }
  0xd1   :  { %v1408_v35 = vpop.f32.mrf.mxu2 }
  0xd2   :  { %v575_v36 = vpop.f32.mrf.mxu1 }
  0xd3   :  { %v576_v8 = vadd.f32 %v575_v36, %v547_v3  ;;  %v573_v36 = vadd.f32 %v572_v32, %v544_v27 }
  0xd4   :  { %v652_v37 = vpop.f32.mrf.mxu0 }
  0xd7   :  { %v623_v38 = vpop.f32.mrf.mxu3 }
  0xd8   :  { %v624_v56 = vadd.f32 %v623_v38, %v595_v52  ;;  %v621_v38 = vadd.f32 %v620_v34, %v1404_v19 }
  0xd9   :  { %v604_v39 = vpop.f32.mrf.mxu2 }
  0xda   :  { %v577_v40 = vpop.f32.mrf.mxu1  ;;  %v653_v60 = vadd.f32 %v652_v37, %v624_v56  ;;  %v605_v14 = vadd.f32 %v604_v39, %v576_v8  ;;  %v650_v19 = vadd.f32 %v1406_v33, %v621_v38 }
  0xdb   :  { %v578_v28 = vadd.f32 %v577_v40, %v549_v10 }
  0xdc   :  { %v654_v41 = vpop.f32.mrf.mxu0 }
  0xdf   :  { %v625_v42 = vpop.f32.mrf.mxu3 }
  0xe0   :  { %v626_v1 = vadd.f32 %v625_v42, %v597_v61 }
  0xe1   :  { %v606_v43 = vpop.f32.mrf.mxu2 }
  0xe2   :  { %v681_v44 = vpop.f32.mrf.mxu1  ;;  %v655_v11 = vadd.f32 %v654_v41, %v626_v1  ;;  %v607_v39 = vadd.f32 %v606_v43, %v578_v28  ;;  %v602_v41 = vadd.f32 %v1408_v35, %v573_v36 }
  0xe3   :  { %v682_v62 = vadd.f32 %v681_v44, %v653_v60 }
  0xe4   :  { %v657_v45 = vpop.f32.mrf.mxu0 }
  0xe7   :  { %v628_v47 = vpop.f32.mrf.mxu3 }
  0xe8   :  { %v629_v22 = vadd.f32 %v628_v47, %v600_v15 }
  0xe9   :  { %v705_v48 = vpop.f32.mrf.mxu2 }
  0xea   :  { %v683_v49 = vpop.f32.mrf.mxu1  ;;  %v658_v37 = vadd.f32 %v657_v45, %v629_v22 }
  0xeb   :  { %v684_v16 = vadd.f32 %v683_v49, %v655_v11 }
  0xec   :  { %v1411_v51 = vpop.f32.mrf.mxu0 }
  0xef   :  { %v630_v53 = vpop.f32.mrf.mxu3 }
  0xf0   :  { %v631_v46 = vadd.f32 %v630_v53, %v602_v41 }
  0xf1   :  { %v1413_v54 = vpop.f32.mrf.mxu2 }
  0xf2   :  { %v686_v57 = vpop.f32.mrf.mxu1  ;;  %v660_v47 = vadd.f32 %v1411_v51, %v631_v46 }
  0xf3   :  { %v687_v42 = vadd.f32 %v686_v57, %v658_v37 }
  0xf4   :  { %v662_v58 = vpop.f32.mrf.mxu0 }
  0xf7   :  { %v633_v63 = vpop.f32.mrf.mxu3 }
  0xf8   :  { %v634_v20 = vadd.f32 %v633_v63, %v605_v14 }
  0xf9   :  { %v710_v0 = vpop.f32.mrf.mxu2 }
  0xfa   :  { %v711_v2 = vadd.f32 %v710_v0, %v682_v62  ;;  %v688_v4 = vpop.f32.mrf.mxu1  ;;  %v663_v31 = vadd.f32 %v662_v58, %v634_v20 }
  0xfb   :  { %v689_v50 = vadd.f32 %v688_v4, %v660_v47 }
  0xfc   :  { %728 = vst.msk [vmem:[%s1462_s3 + $0x10] sm:$0xff] %vm725_vm1, %v711_v2  ;;  %v664_v7 = vpop.f32.mrf.mxu0 }
  0xff   :  { %v635_v18 = vpop.f32.mrf.mxu3 }
 0x100   :  { %v636_v17 = vadd.f32 %v635_v18, %v607_v39 }
 0x101   :  { %v712_v21 = vpop.f32.mrf.mxu2 }
 0x102   :  { %v713_v23 = vadd.f32 %v712_v21, %v684_v16  ;;  %v691_v25 = vpop.f32.mrf.mxu1  ;;  %v665_v45 = vadd.f32 %v664_v7, %v636_v17 }
 0x103   :  { %v692_v29 = vadd.f32 %v691_v25, %v663_v31 }
 0x104   :  { %729 = vst.msk [vmem:[%s1462_s3 + $0x18] sm:$0xff] %vm725_vm1, %v713_v23  ;;  %v676_v12 = vpop.f32.mrf.mxu0 }
 0x105   :  { %v677_v30 = vadd.f32 %v676_v12, %v648_v24 }
 0x107   :  { %v706_v26 = vadd.f32 %v705_v48, %v677_v30  ;;  %v720_v5 = vpop.f32.mrf.mxu3 }
 0x108   :  { %v721_v44 = vadd.f32 %v720_v5, %v692_v29 }
 0x109   :  { %726 = vst.msk [vmem:[%s1462_s3] sm:$0xff] %vm725_vm1, %v706_v26  ;;  %v715_v40 = vpop.f32.mrf.mxu2 }
 0x10a   :  { %v716_v32 = vadd.f32 %v715_v40, %v687_v42  ;;  %732 = vst.msk [vmem:[%s1462_s3 + $0x30] sm:$0xff] %vm725_vm1, %v721_v44  ;;  %v693_v35 = vpop.f32.mrf.mxu1 }
 0x10b   :  { %v694_v49 = vadd.f32 %v693_v35, %v665_v45 }
 0x10c   :  { %730 = vst.msk [vmem:[%s1462_s3 + $0x20] sm:$0xff] %vm725_vm1, %v716_v32  ;;  %v678_v34 = vpop.f32.mrf.mxu0 }
 0x10d   :  { %v679_v43 = vadd.f32 %v678_v34, %v650_v19 }
 0x10f   :  { %v708_v48 = vadd.f32 %v1413_v54, %v679_v43  ;;  %v722_v52 = vpop.f32.mrf.mxu3 }
 0x110   :  { %v723_v53 = vadd.f32 %v722_v52, %v694_v49 }
 0x111   :  { %727 = vst.msk [vmem:[%s1462_s3 + $0x8] sm:$0xff] %vm725_vm1, %v708_v48  ;;  %v717_v33 = vpop.f32.mrf.mxu2 }
 0x112   :  { %v718_v55 = vadd.f32 %v717_v33, %v689_v50  ;;  %733 = vst.msk [vmem:[%s1462_s3 + $0x38] sm:$0xff] %vm725_vm1, %v723_v53 }
 0x114   :  { %731 = vst.msk [vmem:[%s1462_s3 + $0x28] sm:$0xff] %vm725_vm1, %v718_v55 }
 0x115   :  { %738 = vsyncpa [#allocation3], 1 }

</bundles_post_ra>
